<compile_context>
chip_gen: v6e
topology: v6e:2x2x1
jax: 0.10.0
libtpu: 0.0.40
codegen_flags: <defaults>
</compile_context>

<pallas_src>
from functools import partial

import jax
import jax.numpy as jnp
from jax.experimental import pallas as pl
from jax.experimental.pallas import tpu as pltpu

LANE = 128                      # TPU lane width: pad the class dim to this.
COMPUTE_DTYPE = jnp.bfloat16    # MXU input dtype; accumulation stays f32.


def mlp_kernel(x_ref,
               w1_ref, b1_ref,
               w2_ref, b2_ref,
               w3_ref, b3_ref,
               w4_ref, b4_ref,
               o_ref):
    # Four matmuls + ReLUs fused in VMEM. Matmul inputs are bf16 (native MXU
    # rate); bias add / ReLU / accumulation are f32.
    h = jnp.dot(x_ref[...], w1_ref[...],
                preferred_element_type=jnp.float32) + b1_ref[...]
    h = jnp.maximum(h, 0.0)

    h = jnp.dot(h.astype(w2_ref.dtype), w2_ref[...],
                preferred_element_type=jnp.float32) + b2_ref[...]
    h = jnp.maximum(h, 0.0)

    h = jnp.dot(h.astype(w3_ref.dtype), w3_ref[...],
                preferred_element_type=jnp.float32) + b3_ref[...]
    h = jnp.maximum(h, 0.0)

    out = jnp.dot(h.astype(w4_ref.dtype), w4_ref[...],
                  preferred_element_type=jnp.float32) + b4_ref[...]
    o_ref[...] = out.astype(o_ref.dtype)


def prepare_params(params, *, compute_dtype=COMPUTE_DTYPE, lane_pad=LANE):
    """One-time glue (hoisted out of the per-call path).

    Transposes PyTorch-convention (out, in) weights to (in, out), casts the
    weights to the MXU compute dtype, makes biases 2-D f32 rows, and pads the
    final layer's output width to a multiple of the lane width so the kernel's
    output store is lane-dense.
    """
    num_classes = params["w4"].shape[0]
    pad = (-num_classes) % lane_pad

    w4t = params["w4"].T
    b4 = params["b4"]
    if pad:
        w4t = jnp.pad(w4t, ((0, 0), (0, pad)))   # zero columns -> zero logits
        b4 = jnp.pad(b4, (0, pad))

    return dict(
        w1t=params["w1"].T.astype(compute_dtype),
        w2t=params["w2"].T.astype(compute_dtype),
        w3t=params["w3"].T.astype(compute_dtype),
        w4t=w4t.astype(compute_dtype),
        b1=params["b1"][None, :].astype(jnp.float32),
        b2=params["b2"][None, :].astype(jnp.float32),
        b3=params["b3"][None, :].astype(jnp.float32),
        b4=b4[None, :].astype(jnp.float32),
    )


@partial(jax.jit, static_argnames=("num_classes", "tile_b"))
def mnist_mlp_forward(x, prepared, *, num_classes, tile_b=None):
    """Fused MLP forward. x: (B, input_size) f32; prepared: prepare_params()."""
    B, in_features = x.shape

    if tile_b is None:
        # Multiple grid steps (pipelining + megacore) while keeping each tile
        # MXU-friendly; tile_b stays a multiple of 8 (f32 sublane).
        tile_b = min(B, 256)
        while tile_b > 8 and B % tile_b != 0:
            tile_b //= 2
        if B % tile_b != 0:
            tile_b = B
    assert B % tile_b == 0, "batch must be divisible by tile_b"

    x_c = x.astype(COMPUTE_DTYPE)   # halve the HBM x stream

    w1t, w2t, w3t, w4t = (prepared["w1t"], prepared["w2t"],
                          prepared["w3t"], prepared["w4t"])
    b1, b2, b3, b4 = (prepared["b1"], prepared["b2"],
                      prepared["b3"], prepared["b4"])

    h1 = w1t.shape[1]
    h2 = w2t.shape[1]
    h3 = w3t.shape[1]
    c_pad = w4t.shape[1]            # lane-padded class dim (multiple of 128)

    def full(arr):
        # Whole-array block with a constant index_map: DMA'd once, resident
        # in VMEM across all grid steps (no re-fetch per batch tile).
        return pl.BlockSpec(arr.shape, lambda i: (0, 0))

    grid = (B // tile_b,)

    # Advisory cost hint: this kernel is small and memory-bound.
    flops = 2 * B * (in_features * h1 + h1 * h2 + h2 * h3 + h3 * c_pad)
    param_bytes = sum(int(v.size) * v.dtype.itemsize for v in prepared.values())
    bytes_accessed = (int(x_c.size) * x_c.dtype.itemsize
                      + B * c_pad * 4
                      + param_bytes)
    cost = pl.CostEstimate(flops=flops, transcendentals=0,
                           bytes_accessed=bytes_accessed)

    out_padded = pl.pallas_call(
        mlp_kernel,
        out_shape=jax.ShapeDtypeStruct((B, c_pad), jnp.float32),
        grid_spec=pltpu.PrefetchScalarGridSpec(
            num_scalar_prefetch=0,
            grid=grid,
            in_specs=[
                pl.BlockSpec((tile_b, in_features), lambda i: (i, 0)),
                full(w1t), full(b1),
                full(w2t), full(b2),
                full(w3t), full(b3),
                full(w4t), full(b4),
            ],
            out_specs=pl.BlockSpec((tile_b, c_pad), lambda i: (i, 0)),
        ),
        compiler_params=pltpu.CompilerParams(
            dimension_semantics=("parallel",)),
        cost_estimate=cost,
    )(x_c, w1t, b1, w2t, b2, w3t, b3, w4t, b4)

    # Drop the zero-padded logit columns.
    return out_padded[:, :num_classes]


def init_params(key, input_size, h1, h2, h3, num_classes):
    """Deterministic synthetic parameters (PyTorch (out, in) convention)."""
    ks = jax.random.split(key, 8)

    def lin(kw, kb, fan_in, fan_out):
        scale = 1.0 / jnp.sqrt(fan_in)
        w = jax.random.uniform(kw, (fan_out, fan_in), jnp.float32, -scale, scale)
        b = jax.random.uniform(kb, (fan_out,), jnp.float32, -scale, scale)
        return w, b

    w1, b1 = lin(ks[0], ks[1], input_size, h1)
    w2, b2 = lin(ks[2], ks[3], h1, h2)
    w3, b3 = lin(ks[4], ks[5], h2, h3)
    w4, b4 = lin(ks[6], ks[7], h3, num_classes)
    return dict(w1=w1, b1=b1, w2=w2, b2=b2, w3=w3, b3=b3, w4=w4, b4=b4)


def reference_forward(x, p):
    h = jnp.maximum(x @ p["w1"].T + p["b1"], 0.0)
    h = jnp.maximum(h @ p["w2"].T + p["b2"], 0.0)
    h = jnp.maximum(h @ p["w3"].T + p["b3"], 0.0)
    return h @ p["w4"].T + p["b4"]


if __name__ == "__main__":
    key = jax.random.PRNGKey(0)
    k_x, k_p = jax.random.split(key)

    # Small-but-representative shapes: batch 512 tiled at 128 -> grid of 4
    # steps (double-buffered x/out, both TCs busy on v7x). MNIST-like dims.
    B, input_size, h1, h2, h3, num_classes = 512, 256, 128, 64, 32, 10

    x = jax.random.normal(k_x, (B, input_size), jnp.float32)
    params = init_params(k_p, input_size, h1, h2, h3, num_classes)

    prepared = prepare_params(params)   # one-time transpose / pad / cast

    out = mnist_mlp_forward(x, prepared, num_classes=num_classes, tile_b=128)
    out = jax.block_until_ready(out)

    ref = reference_forward(x, params)
    assert out.shape == (B, num_classes)
    # bf16 inputs/weights with f32 accumulation: loosened tolerance vs f32 ref.
    max_err = float(jnp.max(jnp.abs(out - ref)))
    assert jnp.allclose(out, ref, atol=5e-2, rtol=5e-2), max_err

    print("KERNEL_OK")
</pallas_src>

<mosaic_0001>
module attributes {stable_mosaic.version = 11 : i64} {
  func.func @mlp_kernel(%arg0: i32, %arg1: memref<128x256xbf16, #tpu.memory_space<vmem>>, %arg2: memref<256x128xbf16, #tpu.memory_space<vmem>>, %arg3: memref<1x128xf32, #tpu.memory_space<vmem>>, %arg4: memref<128x64xbf16, #tpu.memory_space<vmem>>, %arg5: memref<1x64xf32, #tpu.memory_space<vmem>>, %arg6: memref<64x32xbf16, #tpu.memory_space<vmem>>, %arg7: memref<1x32xf32, #tpu.memory_space<vmem>>, %arg8: memref<32x128xbf16, #tpu.memory_space<vmem>>, %arg9: memref<1x128xf32, #tpu.memory_space<vmem>>, %arg10: memref<128x128xf32, #tpu.memory_space<vmem>>) attributes {dimension_semantics = [#tpu.dimension_semantics<parallel>], iteration_bounds = array<i64: 4>, scalar_prefetch = 0 : i64, scratch_operands = 0 : i64, tpu.core_type = #tpu.core_type<tc>, window_params = [{transform_indices = @transform_0, window_bounds = array<i64: 128, 256>}, {pipeline_mode = #tpu.pipeline_mode<synchronous>, transform_indices = @transform_1, window_bounds = array<i64: 256, 128>}, {pipeline_mode = #tpu.pipeline_mode<synchronous>, transform_indices = @transform_2, window_bounds = array<i64: 1, 128>}, {pipeline_mode = #tpu.pipeline_mode<synchronous>, transform_indices = @transform_3, window_bounds = array<i64: 128, 64>}, {pipeline_mode = #tpu.pipeline_mode<synchronous>, transform_indices = @transform_4, window_bounds = array<i64: 1, 64>}, {pipeline_mode = #tpu.pipeline_mode<synchronous>, transform_indices = @transform_5, window_bounds = array<i64: 64, 32>}, {pipeline_mode = #tpu.pipeline_mode<synchronous>, transform_indices = @transform_6, window_bounds = array<i64: 1, 32>}, {pipeline_mode = #tpu.pipeline_mode<synchronous>, transform_indices = @transform_7, window_bounds = array<i64: 32, 128>}, {pipeline_mode = #tpu.pipeline_mode<synchronous>, transform_indices = @transform_8, window_bounds = array<i64: 1, 128>}, {transform_indices = @transform_9, window_bounds = array<i64: 128, 128>}]} {
    %c0 = arith.constant 0 : index
    %c0_0 = arith.constant 0 : index
    %0 = vector.load %arg1[%c0, %c0_0] : memref<128x256xbf16, #tpu.memory_space<vmem>>, vector<128x256xbf16>
    %c0_1 = arith.constant 0 : index
    %c0_2 = arith.constant 0 : index
    %1 = vector.load %arg2[%c0_1, %c0_2] : memref<256x128xbf16, #tpu.memory_space<vmem>>, vector<256x128xbf16>
    %cst = arith.constant dense<0.000000e+00> : vector<128x128xf32>
    %2 = tpu.matmul %0, %1, %cst {dimension_numbers = #tpu.dot_dimension_numbers<[1], [0], [0], [1], [0, 0, 1, 1], [], []>} : vector<128x256xbf16>, vector<256x128xbf16>, vector<128x128xf32> -> vector<128x128xf32>
    %c0_3 = arith.constant 0 : index
    %c0_4 = arith.constant 0 : index
    %3 = vector.load %arg3[%c0_3, %c0_4] : memref<1x128xf32, #tpu.memory_space<vmem>>, vector<1x128xf32>
    %4 = vector.broadcast %3 : vector<1x128xf32> to vector<128x128xf32>
    %5 = arith.addf %2, %4 : vector<128x128xf32>
    %cst_5 = arith.constant 0.000000e+00 : f32
    %6 = vector.broadcast %cst_5 : f32 to vector<128x128xf32>
    %7 = arith.maximumf %5, %6 : vector<128x128xf32>
    %8 = arith.truncf %7 : vector<128x128xf32> to vector<128x128xbf16>
    %c0_6 = arith.constant 0 : index
    %c0_7 = arith.constant 0 : index
    %9 = vector.load %arg4[%c0_6, %c0_7] : memref<128x64xbf16, #tpu.memory_space<vmem>>, vector<128x64xbf16>
    %cst_8 = arith.constant dense<0.000000e+00> : vector<128x64xf32>
    %10 = tpu.matmul %8, %9, %cst_8 {dimension_numbers = #tpu.dot_dimension_numbers<[1], [0], [0], [1], [0, 0, 1, 1], [], []>} : vector<128x128xbf16>, vector<128x64xbf16>, vector<128x64xf32> -> vector<128x64xf32>
    %c0_9 = arith.constant 0 : index
    %c0_10 = arith.constant 0 : index
    %11 = vector.load %arg5[%c0_9, %c0_10] : memref<1x64xf32, #tpu.memory_space<vmem>>, vector<1x64xf32>
    %12 = vector.broadcast %11 : vector<1x64xf32> to vector<128x64xf32>
    %13 = arith.addf %10, %12 : vector<128x64xf32>
    %cst_11 = arith.constant 0.000000e+00 : f32
    %14 = vector.broadcast %cst_11 : f32 to vector<128x64xf32>
    %15 = arith.maximumf %13, %14 : vector<128x64xf32>
    %16 = arith.truncf %15 : vector<128x64xf32> to vector<128x64xbf16>
    %c0_12 = arith.constant 0 : index
    %c0_13 = arith.constant 0 : index
    %17 = vector.load %arg6[%c0_12, %c0_13] : memref<64x32xbf16, #tpu.memory_space<vmem>>, vector<64x32xbf16>
    %cst_14 = arith.constant dense<0.000000e+00> : vector<128x32xf32>
    %18 = tpu.matmul %16, %17, %cst_14 {dimension_numbers = #tpu.dot_dimension_numbers<[1], [0], [0], [1], [0, 0, 1, 1], [], []>} : vector<128x64xbf16>, vector<64x32xbf16>, vector<128x32xf32> -> vector<128x32xf32>
    %c0_15 = arith.constant 0 : index
    %c0_16 = arith.constant 0 : index
    %19 = vector.load %arg7[%c0_15, %c0_16] : memref<1x32xf32, #tpu.memory_space<vmem>>, vector<1x32xf32>
    %20 = vector.broadcast %19 : vector<1x32xf32> to vector<128x32xf32>
    %21 = arith.addf %18, %20 : vector<128x32xf32>
    %cst_17 = arith.constant 0.000000e+00 : f32
    %22 = vector.broadcast %cst_17 : f32 to vector<128x32xf32>
    %23 = arith.maximumf %21, %22 : vector<128x32xf32>
    %24 = arith.truncf %23 : vector<128x32xf32> to vector<128x32xbf16>
    %c0_18 = arith.constant 0 : index
    %c0_19 = arith.constant 0 : index
    %25 = vector.load %arg8[%c0_18, %c0_19] : memref<32x128xbf16, #tpu.memory_space<vmem>>, vector<32x128xbf16>
    %cst_20 = arith.constant dense<0.000000e+00> : vector<128x128xf32>
    %26 = tpu.matmul %24, %25, %cst_20 {dimension_numbers = #tpu.dot_dimension_numbers<[1], [0], [0], [1], [0, 0, 1, 1], [], []>} : vector<128x32xbf16>, vector<32x128xbf16>, vector<128x128xf32> -> vector<128x128xf32>
    %c0_21 = arith.constant 0 : index
    %c0_22 = arith.constant 0 : index
    %27 = vector.load %arg9[%c0_21, %c0_22] : memref<1x128xf32, #tpu.memory_space<vmem>>, vector<1x128xf32>
    %28 = vector.broadcast %27 : vector<1x128xf32> to vector<128x128xf32>
    %29 = arith.addf %26, %28 : vector<128x128xf32>
    %c0_23 = arith.constant 0 : index
    %c0_24 = arith.constant 0 : index
    %30 = vector.load %arg10[%c0_23, %c0_24] : memref<128x128xf32, #tpu.memory_space<vmem>>, vector<128x128xf32>
    tpu.vector_store %arg10[%c0_23, %c0_24], %29 {strides = array<i32>} : memref<128x128xf32, #tpu.memory_space<vmem>>, vector<128x128xf32>,
    return
  }
  func.func @transform_0(%arg0: i32) -> (i32, i32) {
    %c0_i32 = arith.constant 0 : i32
    %c0_i32_0 = arith.constant 0 : i32
    return %arg0, %c0_i32 : i32, i32
  }
  func.func @transform_1(%arg0: i32) -> (i32, i32) {
    %c0_i32 = arith.constant 0 : i32
    %c0_i32_0 = arith.constant 0 : i32
    %c0_i32_1 = arith.constant 0 : i32
    return %c0_i32, %c0_i32_0 : i32, i32
  }
  func.func @transform_2(%arg0: i32) -> (i32, i32) {
    %c0_i32 = arith.constant 0 : i32
    %c0_i32_0 = arith.constant 0 : i32
    %c0_i32_1 = arith.constant 0 : i32
    return %c0_i32, %c0_i32_0 : i32, i32
  }
  func.func @transform_3(%arg0: i32) -> (i32, i32) {
    %c0_i32 = arith.constant 0 : i32
    %c0_i32_0 = arith.constant 0 : i32
    %c0_i32_1 = arith.constant 0 : i32
    return %c0_i32, %c0_i32_0 : i32, i32
  }
  func.func @transform_4(%arg0: i32) -> (i32, i32) {
    %c0_i32 = arith.constant 0 : i32
    %c0_i32_0 = arith.constant 0 : i32
    %c0_i32_1 = arith.constant 0 : i32
    return %c0_i32, %c0_i32_0 : i32, i32
  }
  func.func @transform_5(%arg0: i32) -> (i32, i32) {
    %c0_i32 = arith.constant 0 : i32
    %c0_i32_0 = arith.constant 0 : i32
    %c0_i32_1 = arith.constant 0 : i32
    return %c0_i32, %c0_i32_0 : i32, i32
  }
  func.func @transform_6(%arg0: i32) -> (i32, i32) {
    %c0_i32 = arith.constant 0 : i32
    %c0_i32_0 = arith.constant 0 : i32
    %c0_i32_1 = arith.constant 0 : i32
    return %c0_i32, %c0_i32_0 : i32, i32
  }
  func.func @transform_7(%arg0: i32) -> (i32, i32) {
    %c0_i32 = arith.constant 0 : i32
    %c0_i32_0 = arith.constant 0 : i32
    %c0_i32_1 = arith.constant 0 : i32
    return %c0_i32, %c0_i32_0 : i32, i32
  }
  func.func @transform_8(%arg0: i32) -> (i32, i32) {
    %c0_i32 = arith.constant 0 : i32
    %c0_i32_0 = arith.constant 0 : i32
    %c0_i32_1 = arith.constant 0 : i32
    return %c0_i32, %c0_i32_0 : i32, i32
  }
  func.func @transform_9(%arg0: i32) -> (i32, i32) {
    %c0_i32 = arith.constant 0 : i32
    %c0_i32_0 = arith.constant 0 : i32
    return %arg0, %c0_i32 : i32, i32
  }
}

</mosaic_0001>

<bundles_post_ra>
// kernel: mnist_mlp_forward.1
= control target key start
LH: loop header
LB: loop body
LE: loop exit
PB: predicated region body
PF: predicated region fallthrough
CT: control target
= control target key end

     0   :  { %s1667_s30 = smov 0   ;;  %s1863_s0 = inlined_call_operand.vmem [shape: bf16[512,256], index: 0, kind: input, shape index: {}]   ;;  %s1864_s1 = inlined_call_operand.vmem [shape: bf16[256,128], index: 1, kind: input, shape index: {}]   ;;  %s1865_s2 = inlined_call_operand.vmem [shape: f32[1,128], index: 2, kind: input, shape index: {}]   ;;  %s1866_s3 = inlined_call_operand.vmem [shape: bf16[128,64], index: 3, kind: input, shape index: {}]   ;;  %s1867_s4 = inlined_call_operand.vmem [shape: f32[1,64], index: 4, kind: input, shape index: {}]   ;;  %s1868_s5 = inlined_call_operand.vmem [shape: bf16[64,32], index: 5, kind: input, shape index: {}]   ;;  %s1869_s6 = inlined_call_operand.vmem [shape: f32[1,32], index: 6, kind: input, shape index: {}]   ;;  %s1870_s7 = inlined_call_operand.vmem [shape: bf16[32,128], index: 7, kind: input, shape index: {}]   ;;  %s1871_s8 = inlined_call_operand.vmem [shape: f32[1,128], index: 8, kind: input, shape index: {}]   ;;  %s1872_s9 = inlined_call_operand.vmem [shape: f32[512,128], index: 9, kind: output, shape index: {}]  }
   0x1 LB: > { %s1286_s10 = sadd.s32 4294967295, %s1615_s30   ;;  %p1290_p0 = scmp.ge.s32.totalorder %s1615_s30, 1  ;;  %s1615_s30 = sphi %s1667_s30, %s19_s30  }
   0x2   : > { %p289_p1 = scmp.lt.s32.totalorder %s1615_s30, 5 }
   0x4   : > { %p290_p2 = pnand %p1290_p0, %p289_p1 }
   0x5   : > { %s1291_s13 = sshll.u32 (!%p290_p2), %s1286_s10, 4 }
   0x6   : > { %293 = sbr.rel (%p290_p2) target bundleno = 921 (0x399), region = 56  ;;  %p327_p3 = scmp.lt.s32.totalorder (!%p290_p2), %s1291_s13, 63 }
   0xb   : > { %v1555_v0 = vld [vmem:[%s1864_s1 + $0x78] sm:$0xff]   ;;  %v1557_v2 = vld [vmem:[%s1864_s1 + $0x70] sm:$0xff]   ;;  %v1559_v4 = vld [vmem:[%s1864_s1 + $0x68] sm:$0xff]   ;;  %s1874_s13 = smov (!%p327_p3, %s1291_s13), 63  ;;  %vm923_vm0 = vcmask 523264   ;;  %vm1092_vm1 = vcmask 261120  }
   0xc   : > { %v1556_v1 = vld [vmem:[%s1864_s1 + $0x38] sm:$0xff]   ;;  %1365 = vmatprep.subr.bf16.mxu0 %v1555_v0  ;;  %v1558_v3 = vld [vmem:[%s1864_s1 + $0x30] sm:$0xff]   ;;  %v1560_v5 = vld [vmem:[%s1864_s1 + $0x28] sm:$0xff]   ;;  %s1364_s28 = sshll.u32 %s1874_s13, 3 }
   0xd   : > { %1366 = vmatpush3.bf16.msra.mxu0 %v1556_v1  ;;  %v1561_v6 = vld [vmem:[%s1864_s1 + $0x60] sm:$0xff]   ;;  %v1563_v8 = vld [vmem:[%s1864_s1 + $0x58] sm:$0xff]   ;;  %s1710_s14 = scalar_lea.vmem %s1863_s0, %s1364_s28  ;;  %v1565_v10 = vld [vmem:[%s1864_s1 + $0x50] sm:$0xff]   ;;  %s1842_s12 = scalar_lea.vmem %s1872_s9, %s1364_s28 }
   0xe   : > { %1367 = vmatprep.subr.bf16.mxu0 %v1557_v2  ;;  %v1562_v7 = vld [vmem:[%s1864_s1 + $0x20] sm:$0xff]   ;;  %v1564_v9 = vld [vmem:[%s1864_s1 + $0x18] sm:$0xff]   ;;  %v1566_v12 = vld [vmem:[%s1864_s1 + $0x10] sm:$0xff]  }
   0xf   : > { %v1573_v11 = vld [vmem:[%s1710_s14 + $0x4] ss:$8 sps:$4 sm:$0xff]   ;;  %v1595_v17 = vld [vmem:[%s1866_s3 + $0x38] sm:$0xff]   ;;  %v1571_v18 = vld [vmem:[%s1710_s14] ss:$8 sps:$4 sm:$0xff]  }
  0x10   : > { %603 = vmatprep.mubr.bf16.mxu0 %v1573_v11  ;;  %v1567_v13 = vld [vmem:[%s1864_s1 + $0x48] sm:$0xff]   ;;  %v1569_v15 = vld [vmem:[%s1864_s1 + $0x40] sm:$0xff]   ;;  %v1596_v19 = vld [vmem:[%s1866_s3 + $0x30] sm:$0xff]   ;;  %1467 = vmatprep.subr.bf16.mxu1 %v1595_v17 }
  0x11   : > { %1368 = vmatpush3.bf16.msra.mxu0 %v1558_v3  ;;  %v1568_v14 = vld [vmem:[%s1864_s1 + $0x8] sm:$0xff]   ;;  %v1570_v16 = vld [vmem:[%s1864_s1] sm:$0xff]   ;;  %v1574_v20 = vld [vmem:[%s1710_s14 + $0x14] ss:$8 sps:$4 sm:$0xff]   ;;  %1468 = vmatpush3.bf16.msra.mxu1 %v1595_v17 }
  0x12   : > { %1369 = vmatprep.subr.bf16.mxu0 %v1559_v4  ;;  %v1597_v21 = vld [vmem:[%s1866_s3 + $0x28] sm:$0xff]   ;;  %1469 = vmatprep.subr.bf16.mxu1 %v1596_v19  ;;  %v1576_v22 = vld [vmem:[%s1710_s14 + $0x10] ss:$8 sps:$4 sm:$0xff]   ;;  %v1580_v25 = vld [vmem:[%s1710_s14 + $0x34] ss:$8 sps:$4 sm:$0xff]  }
  0x13   : > { %v1577_v23 = vld [vmem:[%s1710_s14 + $0x24] ss:$8 sps:$4 sm:$0xff]   ;;  %v1579_v24 = vld [vmem:[%s1710_s14 + $0x20] ss:$8 sps:$4 sm:$0xff]   ;;  %v1582_v26 = vld [vmem:[%s1710_s14 + $0x30] ss:$8 sps:$4 sm:$0xff]  }
  0x14   : > { %v1583_v27 = vld [vmem:[%s1710_s14 + $0x44] ss:$8 sps:$4 sm:$0xff]   ;;  %v1585_v28 = vld [vmem:[%s1710_s14 + $0x40] ss:$8 sps:$4 sm:$0xff]   ;;  %v1586_v29 = vld [vmem:[%s1710_s14 + $0x54] ss:$8 sps:$4 sm:$0xff]  }
  0x15   : > { %1370 = vmatpush3.bf16.msra.mxu0 %v1560_v5  ;;  %1470 = vmatpush3.bf16.msra.mxu1 %v1596_v19  ;;  %v1588_v30 = vld [vmem:[%s1710_s14 + $0x50] ss:$8 sps:$4 sm:$0xff]   ;;  %v1589_v31 = vld [vmem:[%s1710_s14 + $0x64] ss:$8 sps:$4 sm:$0xff]   ;;  %v1591_v32 = vld [vmem:[%s1710_s14 + $0x60] ss:$8 sps:$4 sm:$0xff]  }
  0x16   : > { %1371 = vmatprep.subr.bf16.mxu0 %v1561_v6  ;;  %1471 = vmatprep.subr.bf16.mxu1 %v1597_v21  ;;  %v1592_v33 = vld [vmem:[%s1710_s14 + $0x74] ss:$8 sps:$4 sm:$0xff]   ;;  %v1594_v34 = vld [vmem:[%s1710_s14 + $0x70] ss:$8 sps:$4 sm:$0xff]   ;;  %v1598_v35 = vld [vmem:[%s1866_s3 + $0x20] sm:$0xff]  }
  0x17   : > { %v1599_v36 = vld [vmem:[%s1866_s3 + $0x18] sm:$0xff]   ;;  %v1600_v37 = vld [vmem:[%s1866_s3 + $0x10] sm:$0xff]   ;;  %v1601_v38 = vld [vmem:[%s1866_s3 + $0x8] sm:$0xff]  }
  0x18   : > { %v1602_v39 = vld [vmem:[%s1866_s3] sm:$0xff]   ;;  %v1603_v40 = vld [vmem:[%s1868_s5 + $0x18] sm:$0xff]  }
  0x19   : > { %1372 = vmatpush3.bf16.msra.mxu0 %v1562_v7  ;;  %1472 = vmatpush3.bf16.msra.mxu1 %v1597_v21  ;;  %v1779_v45 = vld [vmem:[%s1865_s2] ss:$0 sm:$0xff] }
  0x1a   : > { %1373 = vmatprep.subr.bf16.mxu0 %v1563_v8  ;;  %1473 = vmatprep.subr.bf16.mxu1 %v1598_v35 }
  0x1d   : > { %1374 = vmatpush3.bf16.msra.mxu0 %v1564_v9  ;;  %1474 = vmatpush3.bf16.msra.mxu1 %v1598_v35 }
  0x1e   : > { %1375 = vmatprep.subr.bf16.mxu0 %v1565_v10  ;;  %1475 = vmatprep.subr.bf16.mxu1 %v1599_v36 }
  0x21   : > { %1376 = vmatpush3.bf16.msra.mxu0 %v1566_v12  ;;  %1476 = vmatpush3.bf16.msra.mxu1 %v1599_v36 }
  0x22   : > { %1377 = vmatprep.subr.bf16.mxu0 %v1567_v13  ;;  %1477 = vmatprep.subr.bf16.mxu1 %v1600_v37 }
  0x25   : > { %1378 = vmatpush3.bf16.msra.mxu0 %v1568_v14  ;;  %1478 = vmatpush3.bf16.msra.mxu1 %v1600_v37 }
  0x26   : > { %1379 = vmatprep.subr.bf16.mxu0 %v1569_v15  ;;  %1479 = vmatprep.subr.bf16.mxu1 %v1601_v38 }
  0x29   : > { %1380 = vmatpush3.bf16.msra.mxu0 %v1570_v16  ;;  %1480 = vmatpush3.bf16.msra.mxu1 %v1601_v38 }
  0x2a   : > { %1481 = vmatprep.subr.bf16.mxu1 %v1602_v39 }
  0x2c   : > { %604 = vmatmul.mubr.bf16.vlgmr.msra.gmra.mxu0 %v1571_v18 }
  0x2d   : > { %611 = vmatprep.mubr.bf16.mxu0 %v1574_v20  ;;  %1482 = vmatpush3.bf16.msra.mxu1 %v1602_v39 }
  0x2e   : > { %1499 = vmatprep.subr.bf16.mxu1 %v1603_v40 }
  0x34   : > { %612 = vmatmul.mubr.bf16.gmra.mxu0 %v1576_v22 }
  0x35   : > { %619 = vmatprep.mubr.bf16.mxu0 %v1577_v23 }
  0x3c   : > { %620 = vmatmul.mubr.bf16.gmra.mxu0 %v1579_v24 }
  0x3d   : > { %627 = vmatprep.mubr.bf16.mxu0 %v1580_v25 }
  0x44   : > { %628 = vmatmul.mubr.bf16.gmra.mxu0 %v1582_v26 }
  0x45   : > { %635 = vmatprep.mubr.bf16.mxu0 %v1583_v27 }
  0x4c   : > { %636 = vmatmul.mubr.bf16.gmra.mxu0 %v1585_v28 }
  0x4d   : > { %643 = vmatprep.mubr.bf16.mxu0 %v1586_v29 }
  0x54   : > { %644 = vmatmul.mubr.bf16.gmra.mxu0 %v1588_v30 }
  0x55   : > { %651 = vmatprep.mubr.bf16.mxu0 %v1589_v31 }
  0x5c   : > { %652 = vmatmul.mubr.bf16.gmra.mxu0 %v1591_v32 }
  0x5d   : > { %659 = vmatprep.mubr.bf16.mxu0 %v1592_v33 }
  0x64   : > { %660 = vmatmul.mubr.bf16.gmra.mxu0 %v1594_v34 }
  0xec   : > { %v1381_v41 = vpop.f32.mrf.mxu0 }
  0xee   : > { %v1382_v42 = vpop.f32.mrf.mxu0 }
  0xef   : > { %v1383_v43 = vadd.f32 %v1382_v42, %v1381_v41 }
  0xf0   : > { %v1384_v44 = vpop.f32.mrf.mxu0 }
  0xf1   : > { %v606_v48 = vadd.f32 %v1383_v43, %v1779_v45 }
  0xf2   : > { %v1385_v46 = vpop.f32.mrf.mxu0 }
  0xf3   : > { %v1386_v47 = vadd.f32 %v1385_v46, %v1384_v44  ;;  %v668_v53 = vmax.f32 %v606_v48, 0.0 }
  0xf4   : > { %v1387_v49 = vpop.f32.mrf.mxu0 }
  0xf5   : > { %v609_v50 = vadd.f32 %v1386_v47, %v1779_v45 }
  0xf6   : > { %v1388_v51 = vpop.f32.mrf.mxu0 }
  0xf7   : > { %v1389_v52 = vadd.f32 %v1388_v51, %v1387_v49  ;;  %v669_v54 = vmax.f32 %v609_v50, 0.0 }
  0xf8   : > { %v1390_v55 = vpop.f32.mrf.mxu0 }
  0xf9   : > { %v684_v56 = vpack.c.bf16 %v669_v54, %v668_v53  ;;  %v614_v58 = vadd.f32 %v1389_v52, %v1779_v45 }
  0xfa   : > { %v1391_v57 = vpop.f32.mrf.mxu0 }
  0xfb   : > { %v1392_v59 = vadd.f32 %v1391_v57, %v1390_v55  ;;  %1483 = vmatprep.mubr.bf16.mxu1 %v684_v56  ;;  %v670_v63 = vmax.f32 %v614_v58, 0.0 }
  0xfc   : > { %v1393_v60 = vpop.f32.mrf.mxu0 }
  0xfd   : > { %v617_v61 = vadd.f32 %v1392_v59, %v1779_v45 }
  0xfe   : > { %v1394_v62 = vpop.f32.mrf.mxu0 }
  0xff   : > { %v671_v0 = vmax.f32 %v617_v61, 0.0  ;;  %v1395_v1 = vadd.f32 %v1394_v62, %v1393_v60 }
 0x100   : > { %v1396_v2 = vpop.f32.mrf.mxu0 }
 0x101   : > { %v685_v3 = vpack.c.bf16 %v671_v0, %v670_v63  ;;  %v622_v5 = vadd.f32 %v1395_v1, %v1779_v45 }
 0x102   : > { %v1397_v4 = vpop.f32.mrf.mxu0 }
 0x103   : > { %v1398_v6 = vadd.f32 %v1397_v4, %v1396_v2  ;;  %1484 = vmatmul.mubr.bf16.vlgmr.msra.gmra.mxu1 %v685_v3  ;;  %v672_v10 = vmax.f32 %v622_v5, 0.0  ;;  %v1604_v3 = vld [vmem:[%s1868_s5 + $0x10] sm:$0xff]   ;;  %v1605_v4 = vld [vmem:[%s1868_s5 + $0x8] sm:$0xff]  }
 0x104   : > { %v1399_v7 = vpop.f32.mrf.mxu0  ;;  %1500 = vmatpush3.bf16.msra.mxu1 %v1603_v40  ;;  %v1607_v5 = vld [vmem:[%s1870_s7 + $0x8] sm:$0xff]  }
 0x105   : > { %v625_v8 = vadd.f32 %v1398_v6, %v1779_v45  ;;  %1501 = vmatprep.subr.bf16.mxu1 %v1604_v3  ;;  %1523 = vmatprep.subr.bf16.mxu0 %v1607_v5 }
 0x106   : > { %v1400_v9 = vpop.f32.mrf.mxu0  ;;  %1524 = vmatpush3.bf16.msra.mxu0 %v1607_v5 }
 0x107   : > { %v673_v11 = vmax.f32 %v625_v8, 0.0  ;;  %v1401_v12 = vadd.f32 %v1400_v9, %v1399_v7  ;;  %v1329_v8 = vld [vmem:[%s1867_s4] ss:$0 sm:$0xff] }
 0x108   : > { %v1402_v13 = vpop.f32.mrf.mxu0  ;;  %1502 = vmatpush3.bf16.msra.mxu1 %v1604_v3  ;;  %v1338_v3 = vld [vmem:[%s1869_s6] ss:$0 sm:$0xff] }
 0x109   : > { %v686_v14 = vpack.c.bf16 %v673_v11, %v672_v10  ;;  %v630_v16 = vadd.f32 %v1401_v12, %v1779_v45  ;;  %1503 = vmatprep.subr.bf16.mxu1 %v1605_v4 }
 0x10a   : > { %v1403_v15 = vpop.f32.mrf.mxu0 }
 0x10b   : > { %v1404_v17 = vadd.f32 %v1403_v15, %v1402_v13  ;;  %1487 = vmatprep.mubr.bf16.mxu1 %v686_v14  ;;  %v674_v21 = vmax.f32 %v630_v16, 0.0 }
 0x10c   : > { %v1405_v18 = vpop.f32.mrf.mxu0  ;;  %1504 = vmatpush3.bf16.msra.mxu1 %v1605_v4 }
 0x10d   : > { %v633_v19 = vadd.f32 %v1404_v17, %v1779_v45 }
 0x10e   : > { %v1406_v20 = vpop.f32.mrf.mxu0 }
 0x10f   : > { %v675_v22 = vmax.f32 %v633_v19, 0.0  ;;  %v1407_v23 = vadd.f32 %v1406_v20, %v1405_v18 }
 0x110   : > { %v1408_v24 = vpop.f32.mrf.mxu0 }
 0x111   : > { %v687_v25 = vpack.c.bf16 %v675_v22, %v674_v21  ;;  %v638_v27 = vadd.f32 %v1407_v23, %v1779_v45 }
 0x112   : > { %v1409_v26 = vpop.f32.mrf.mxu0 }
 0x113   : > { %v1410_v28 = vadd.f32 %v1409_v26, %v1408_v24  ;;  %1488 = vmatmul.mubr.bf16.gmra.mxu1 %v687_v25  ;;  %v676_v32 = vmax.f32 %v638_v27, 0.0 }
 0x114   : > { %v1411_v29 = vpop.f32.mrf.mxu0 }
 0x115   : > { %v641_v30 = vadd.f32 %v1410_v28, %v1779_v45 }
 0x116   : > { %v1412_v31 = vpop.f32.mrf.mxu0 }
 0x117   : > { %v677_v33 = vmax.f32 %v641_v30, 0.0  ;;  %v1413_v34 = vadd.f32 %v1412_v31, %v1411_v29 }
 0x118   : > { %v1414_v35 = vpop.f32.mrf.mxu0 }
 0x119   : > { %v688_v36 = vpack.c.bf16 %v677_v33, %v676_v32  ;;  %v646_v38 = vadd.f32 %v1413_v34, %v1779_v45 }
 0x11a   : > { %v1415_v37 = vpop.f32.mrf.mxu0 }
 0x11b   : > { %v1416_v39 = vadd.f32 %v1415_v37, %v1414_v35  ;;  %1491 = vmatprep.mubr.bf16.mxu1 %v688_v36  ;;  %v678_v43 = vmax.f32 %v646_v38, 0.0 }
 0x11c   : > { %v1417_v40 = vpop.f32.mrf.mxu0 }
 0x11d   : > { %v649_v41 = vadd.f32 %v1416_v39, %v1779_v45 }
 0x11e   : > { %v1418_v42 = vpop.f32.mrf.mxu0 }
 0x11f   : > { %v679_v44 = vmax.f32 %v649_v41, 0.0  ;;  %v1419_v46 = vadd.f32 %v1418_v42, %v1417_v40 }
 0x120   : > { %v1420_v47 = vpop.f32.mrf.mxu0 }
 0x121   : > { %v689_v48 = vpack.c.bf16 %v679_v44, %v678_v43  ;;  %v654_v50 = vadd.f32 %v1419_v46, %v1779_v45 }
 0x122   : > { %v1421_v49 = vpop.f32.mrf.mxu0 }
 0x123   : > { %v1422_v51 = vadd.f32 %v1421_v49, %v1420_v47  ;;  %1492 = vmatmul.mubr.bf16.gmra.mxu1 %v689_v48  ;;  %v680_v55 = vmax.f32 %v654_v50, 0.0 }
 0x124   : > { %v1423_v52 = vpop.f32.mrf.mxu0 }
 0x125   : > { %v657_v53 = vadd.f32 %v1422_v51, %v1779_v45 }
 0x126   : > { %v1424_v54 = vpop.f32.mrf.mxu0 }
 0x127   : > { %v681_v56 = vmax.f32 %v657_v53, 0.0  ;;  %v1425_v57 = vadd.f32 %v1424_v54, %v1423_v52 }
 0x128   : > { %v1426_v58 = vpop.f32.mrf.mxu0 }
 0x129   : > { %v690_v59 = vpack.c.bf16 %v681_v56, %v680_v55  ;;  %v662_v61 = vadd.f32 %v1425_v57, %v1779_v45 }
 0x12a   : > { %v1427_v60 = vpop.f32.mrf.mxu0 }
 0x12b   : > { %v1428_v62 = vadd.f32 %v1427_v60, %v1426_v58  ;;  %1495 = vmatprep.mubr.bf16.mxu1 %v690_v59  ;;  %v682_v0 = vmax.f32 %v662_v61, 0.0 }
 0x12d   : > { %v665_v63 = vadd.f32 %v1428_v62, %v1779_v45  ;;  %v1606_v45 = vld [vmem:[%s1868_s5] sm:$0xff]  }
 0x12e   : > { %1505 = vmatprep.subr.bf16.mxu1 %v1606_v45 }
 0x12f   : > { %v683_v1 = vmax.f32 %v665_v63, 0.0  ;;  %1506 = vmatpush3.bf16.msra.mxu1 %v1606_v45 }
 0x130   : > { %1543 = vmatprep.subr.bf16.mxu1 %v1607_v5 }
 0x131   : > { %v691_v2 = vpack.c.bf16 %v683_v1, %v682_v0  ;;  %v1608_v0 = vld [vmem:[%s1870_s7] sm:$0xff]  }
 0x132   : > { %1525 = vmatprep.subr.bf16.mxu0 %v1608_v0 }
 0x133   : > { %1496 = vmatmul.mubr.bf16.gmra.mxu1 %v691_v2  ;;  %1526 = vmatpush3.bf16.msra.mxu0 %v1608_v0 }
 0x1c3   : > { %v1485_v6 = vpop.f32.mrf.mxu1 }
 0x1c4   : > { %v806_v12 = vadd.f32 %v1485_v6, %v1329_v8 }
 0x1c5   : > { %v797_v7 = vpop.f32.mrf.mxu1 }
 0x1c6   : > { %v798_v10 = vadd.f32 %v1329_v8, %v797_v7  ;;  %v862_v18 = vmax.f32 %v806_v12, 0.0 }
 0x1c7   : > { %v1486_v9 = vpop.f32.mrf.mxu1 }
 0x1c8   : > { %v809_v11 = vadd.f32 %v1486_v9, %v1329_v8  ;;  %v860_v16 = vmax.f32 %v798_v10, 0.0 }
 0x1c9   : > { %v800_v13 = vpop.f32.mrf.mxu1 }
 0x1ca   : > { %v801_v14 = vadd.f32 %v1329_v8, %v800_v13  ;;  %v863_v15 = vmax.f32 %v809_v11, 0.0 }
 0x1cc   : > { %v861_v17 = vmax.f32 %v801_v14, 0.0  ;;  %v877_v20 = vpack.c.bf16 %v863_v15, %v862_v18 }
 0x1ce   : > { %v876_v19 = vpack.c.bf16 %v861_v17, %v860_v16 }
 0x1d0   : > { %1507 = vmatprep.mubr.msk.bf16.mxu1 %vm923_vm0, %v876_v19 }
 0x1d1   : > { %1508 = vmatmul.mubr.msk.bf16.vlgmr.msra.gmra.mxu1 %vm923_vm0, %v877_v20 }
 0x1d2   : > { %1545 = vmatpush3.bf16.msra.mxu1 %v1607_v5 }
 0x1d3   : > { %v1489_v21 = vpop.f32.mrf.mxu1  ;;  %1544 = vmatprep.subr.bf16.mxu1 %v1608_v0 }
 0x1d4   : > { %v822_v26 = vadd.f32 %v1489_v21, %v1329_v8 }
 0x1d5   : > { %v813_v22 = vpop.f32.mrf.mxu1 }
 0x1d6   : > { %v814_v24 = vadd.f32 %v1329_v8, %v813_v22  ;;  %v866_v32 = vmax.f32 %v822_v26, 0.0  ;;  %1546 = vmatpush3.bf16.msra.mxu1 %v1608_v0 }
 0x1d7   : > { %v1490_v23 = vpop.f32.mrf.mxu1 }
 0x1d8   : > { %v825_v25 = vadd.f32 %v1490_v23, %v1329_v8  ;;  %v864_v30 = vmax.f32 %v814_v24, 0.0 }
 0x1d9   : > { %v816_v27 = vpop.f32.mrf.mxu1 }
 0x1da   : > { %v817_v28 = vadd.f32 %v1329_v8, %v816_v27  ;;  %v867_v29 = vmax.f32 %v825_v25, 0.0 }
 0x1dc   : > { %v865_v31 = vmax.f32 %v817_v28, 0.0  ;;  %v879_v34 = vpack.c.bf16 %v867_v29, %v866_v32 }
 0x1de   : > { %v878_v33 = vpack.c.bf16 %v865_v31, %v864_v30 }
 0x1e0   : > { %1511 = vmatprep.mubr.msk.bf16.mxu1 %vm923_vm0, %v878_v33 }
 0x1e1   : > { %1512 = vmatmul.mubr.msk.bf16.gmra.mxu1 %vm923_vm0, %v879_v34 }
 0x1e3   : > { %v1493_v35 = vpop.f32.mrf.mxu1 }
 0x1e4   : > { %v838_v40 = vadd.f32 %v1493_v35, %v1329_v8 }
 0x1e5   : > { %v829_v36 = vpop.f32.mrf.mxu1 }
 0x1e6   : > { %v830_v38 = vadd.f32 %v1329_v8, %v829_v36  ;;  %v870_v47 = vmax.f32 %v838_v40, 0.0 }
 0x1e7   : > { %v1494_v37 = vpop.f32.mrf.mxu1 }
 0x1e8   : > { %v841_v39 = vadd.f32 %v1494_v37, %v1329_v8  ;;  %v868_v44 = vmax.f32 %v830_v38, 0.0 }
 0x1e9   : > { %v832_v41 = vpop.f32.mrf.mxu1 }
 0x1ea   : > { %v833_v42 = vadd.f32 %v1329_v8, %v832_v41  ;;  %v871_v43 = vmax.f32 %v841_v39, 0.0 }
 0x1ec   : > { %v869_v46 = vmax.f32 %v833_v42, 0.0  ;;  %v881_v49 = vpack.c.bf16 %v871_v43, %v870_v47 }
 0x1ee   : > { %v880_v48 = vpack.c.bf16 %v869_v46, %v868_v44 }
 0x1f0   : > { %1515 = vmatprep.mubr.msk.bf16.mxu1 %vm923_vm0, %v880_v48 }
 0x1f1   : > { %1516 = vmatmul.mubr.msk.bf16.gmra.mxu1 %vm923_vm0, %v881_v49 }
 0x1f3   : > { %v1497_v50 = vpop.f32.mrf.mxu1 }
 0x1f4   : > { %v854_v55 = vadd.f32 %v1497_v50, %v1329_v8 }
 0x1f5   : > { %v845_v51 = vpop.f32.mrf.mxu1 }
 0x1f6   : > { %v846_v53 = vadd.f32 %v1329_v8, %v845_v51  ;;  %v874_v61 = vmax.f32 %v854_v55, 0.0 }
 0x1f7   : > { %v1498_v52 = vpop.f32.mrf.mxu1 }
 0x1f8   : > { %v857_v54 = vadd.f32 %v1498_v52, %v1329_v8  ;;  %v872_v59 = vmax.f32 %v846_v53, 0.0 }
 0x1f9   : > { %v848_v56 = vpop.f32.mrf.mxu1 }
 0x1fa   : > { %v849_v57 = vadd.f32 %v1329_v8, %v848_v56  ;;  %v875_v58 = vmax.f32 %v857_v54, 0.0 }
 0x1fc   : > { %v873_v60 = vmax.f32 %v849_v57, 0.0  ;;  %v883_v63 = vpack.c.bf16 %v875_v58, %v874_v61  ;;  %v1351_v58 = vld [vmem:[%s1871_s8] ss:$0 sm:$0xff] }
 0x1fe   : > { %v882_v62 = vpack.c.bf16 %v873_v60, %v872_v59 }
 0x200   : > { %1519 = vmatprep.mubr.msk.bf16.mxu1 %vm923_vm0, %v882_v62 }
 0x201   : > { %1520 = vmatmul.mubr.msk.bf16.gmra.mxu1 %vm923_vm0, %v883_v63 }
 0x291   : > { %v1509_v1 = vpop.f32.mrf.mxu1 }
 0x292   : > { %v991_v6 = vadd.f32 %v1509_v1, %v1338_v3 }
 0x293   : > { %v982_v2 = vpop.f32.mrf.mxu1 }
 0x294   : > { %v983_v45 = vadd.f32 %v1338_v3, %v982_v2  ;;  %v1047_v12 = vmax.f32 %v991_v6, 0.0 }
 0x295   : > { %v1510_v4 = vpop.f32.mrf.mxu1 }
 0x296   : > { %v994_v5 = vadd.f32 %v1510_v4, %v1338_v3  ;;  %v1045_v10 = vmax.f32 %v983_v45, 0.0 }
 0x297   : > { %v985_v7 = vpop.f32.mrf.mxu1 }
 0x298   : > { %v986_v8 = vadd.f32 %v1338_v3, %v985_v7  ;;  %v1048_v9 = vmax.f32 %v994_v5, 0.0 }
 0x29a   : > { %v1046_v11 = vmax.f32 %v986_v8, 0.0  ;;  %v1062_v14 = vpack.c.bf16 %v1048_v9, %v1047_v12 }
 0x29c   : > { %v1061_v13 = vpack.c.bf16 %v1046_v11, %v1045_v10 }
 0x29e   : > { %1527 = vmatprep.mubr.msk.bf16.mxu0 %vm1092_vm1, %v1061_v13 }
 0x29f   : > { %1528 = vmatmul.mubr.msk.bf16.vlgmr.msra.gmra.mxu0 %vm1092_vm1, %v1062_v14 }
 0x2a1   : > { %v1513_v15 = vpop.f32.mrf.mxu1 }
 0x2a2   : > { %v1007_v20 = vadd.f32 %v1513_v15, %v1338_v3 }
 0x2a3   : > { %v998_v16 = vpop.f32.mrf.mxu1 }
 0x2a4   : > { %v999_v18 = vadd.f32 %v1338_v3, %v998_v16  ;;  %v1051_v26 = vmax.f32 %v1007_v20, 0.0 }
 0x2a5   : > { %v1514_v17 = vpop.f32.mrf.mxu1 }
 0x2a6   : > { %v1010_v19 = vadd.f32 %v1514_v17, %v1338_v3  ;;  %v1049_v24 = vmax.f32 %v999_v18, 0.0 }
 0x2a7   : > { %v1001_v21 = vpop.f32.mrf.mxu1 }
 0x2a8   : > { %v1002_v22 = vadd.f32 %v1338_v3, %v1001_v21  ;;  %v1052_v23 = vmax.f32 %v1010_v19, 0.0 }
 0x2aa   : > { %v1050_v25 = vmax.f32 %v1002_v22, 0.0  ;;  %v1064_v28 = vpack.c.bf16 %v1052_v23, %v1051_v26 }
 0x2ac   : > { %v1063_v27 = vpack.c.bf16 %v1050_v25, %v1049_v24 }
 0x2ae   : > { %1531 = vmatprep.mubr.msk.bf16.mxu0 %vm1092_vm1, %v1063_v27 }
 0x2af   : > { %1532 = vmatmul.mubr.msk.bf16.gmra.mxu0 %vm1092_vm1, %v1064_v28 }
 0x2b1   : > { %v1517_v29 = vpop.f32.mrf.mxu1 }
 0x2b2   : > { %v1023_v34 = vadd.f32 %v1517_v29, %v1338_v3 }
 0x2b3   : > { %v1014_v30 = vpop.f32.mrf.mxu1 }
 0x2b4   : > { %v1015_v32 = vadd.f32 %v1338_v3, %v1014_v30  ;;  %v1055_v40 = vmax.f32 %v1023_v34, 0.0 }
 0x2b5   : > { %v1518_v31 = vpop.f32.mrf.mxu1 }
 0x2b6   : > { %v1026_v33 = vadd.f32 %v1518_v31, %v1338_v3  ;;  %v1053_v38 = vmax.f32 %v1015_v32, 0.0 }
 0x2b7   : > { %v1017_v35 = vpop.f32.mrf.mxu1 }
 0x2b8   : > { %v1018_v36 = vadd.f32 %v1338_v3, %v1017_v35  ;;  %v1056_v37 = vmax.f32 %v1026_v33, 0.0 }
 0x2ba   : > { %v1054_v39 = vmax.f32 %v1018_v36, 0.0  ;;  %v1066_v42 = vpack.c.bf16 %v1056_v37, %v1055_v40 }
 0x2bc   : > { %v1065_v41 = vpack.c.bf16 %v1054_v39, %v1053_v38 }
 0x2be   : > { %1535 = vmatprep.mubr.msk.bf16.mxu1 %vm1092_vm1, %v1065_v41 }
 0x2bf   : > { %1536 = vmatmul.mubr.msk.bf16.vlgmr.msra.gmra.mxu1 %vm1092_vm1, %v1066_v42 }
 0x2c1   : > { %v1521_v43 = vpop.f32.mrf.mxu1 }
 0x2c2   : > { %v1039_v49 = vadd.f32 %v1521_v43, %v1338_v3 }
 0x2c3   : > { %v1030_v44 = vpop.f32.mrf.mxu1 }
 0x2c4   : > { %v1031_v47 = vadd.f32 %v1338_v3, %v1030_v44  ;;  %v1059_v55 = vmax.f32 %v1039_v49, 0.0 }
 0x2c5   : > { %v1522_v46 = vpop.f32.mrf.mxu1 }
 0x2c6   : > { %v1042_v48 = vadd.f32 %v1522_v46, %v1338_v3  ;;  %v1057_v53 = vmax.f32 %v1031_v47, 0.0 }
 0x2c7   : > { %v1033_v50 = vpop.f32.mrf.mxu1 }
 0x2c8   : > { %v1034_v51 = vadd.f32 %v1338_v3, %v1033_v50  ;;  %v1060_v52 = vmax.f32 %v1042_v48, 0.0 }
 0x2ca   : > { %v1058_v54 = vmax.f32 %v1034_v51, 0.0  ;;  %v1068_v57 = vpack.c.bf16 %v1060_v52, %v1059_v55 }
 0x2cc   : > { %v1067_v56 = vpack.c.bf16 %v1058_v54, %v1057_v53 }
 0x2ce   : > { %1539 = vmatprep.mubr.msk.bf16.mxu1 %vm1092_vm1, %v1067_v56 }
 0x2cf   : > { %1540 = vmatmul.mubr.msk.bf16.gmra.mxu1 %vm1092_vm1, %v1068_v57 }
 0x35f   : > { %v1529_v59 = vpop.f32.mrf.mxu0 }
 0x360   : > { %v1160_v60 = vadd.f32 %v1529_v59, %v1351_v58 }
 0x361   : > { %v1151_v61 = vpop.f32.mrf.mxu0 }
 0x362   : > { %1216 = vst [vmem:[%s1842_s12 + $0x10] sm:$0xff] %v1160_v60  ;;  %v1152_v62 = vadd.f32 %v1351_v58, %v1151_v61 }
 0x363   : > { %v1530_v63 = vpop.f32.mrf.mxu0 }
 0x364   : > { %1214 = vst [vmem:[%s1842_s12] sm:$0xff] %v1152_v62  ;;  %v1163_v0 = vadd.f32 %v1530_v63, %v1351_v58 }
 0x365   : > { %v1154_v1 = vpop.f32.mrf.mxu0 }
 0x366   : > { %1217 = vst [vmem:[%s1842_s12 + $0x18] sm:$0xff] %v1163_v0  ;;  %v1155_v2 = vadd.f32 %v1351_v58, %v1154_v1 }
 0x368   : > { %1215 = vst [vmem:[%s1842_s12 + $0x8] sm:$0xff] %v1155_v2 }
 0x36f   : > { %v1533_v3 = vpop.f32.mrf.mxu0 }
 0x370   : > { %v1176_v4 = vadd.f32 %v1533_v3, %v1351_v58 }
 0x371   : > { %v1167_v45 = vpop.f32.mrf.mxu0 }
 0x372   : > { %1220 = vst [vmem:[%s1842_s12 + $0x30] sm:$0xff] %v1176_v4  ;;  %v1168_v5 = vadd.f32 %v1351_v58, %v1167_v45 }
 0x373   : > { %v1534_v6 = vpop.f32.mrf.mxu0 }
 0x374   : > { %1218 = vst [vmem:[%s1842_s12 + $0x20] sm:$0xff] %v1168_v5  ;;  %v1179_v7 = vadd.f32 %v1534_v6, %v1351_v58 }
 0x375   : > { %v1170_v8 = vpop.f32.mrf.mxu0 }
 0x376   : > { %1221 = vst [vmem:[%s1842_s12 + $0x38] sm:$0xff] %v1179_v7  ;;  %v1171_v9 = vadd.f32 %v1351_v58, %v1170_v8 }
 0x378   : > { %1219 = vst [vmem:[%s1842_s12 + $0x28] sm:$0xff] %v1171_v9 }
 0x37f   : > { %v1537_v10 = vpop.f32.mrf.mxu1 }
 0x380   : > { %v1192_v11 = vadd.f32 %v1537_v10, %v1351_v58 }
 0x381   : > { %v1183_v12 = vpop.f32.mrf.mxu1 }
 0x382   : > { %1224 = vst [vmem:[%s1842_s12 + $0x50] sm:$0xff] %v1192_v11  ;;  %v1184_v13 = vadd.f32 %v1351_v58, %v1183_v12 }
 0x383   : > { %v1538_v14 = vpop.f32.mrf.mxu1 }
 0x384   : > { %1222 = vst [vmem:[%s1842_s12 + $0x40] sm:$0xff] %v1184_v13  ;;  %v1195_v15 = vadd.f32 %v1538_v14, %v1351_v58 }
 0x385   : > { %v1186_v16 = vpop.f32.mrf.mxu1 }
 0x386   : > { %1225 = vst [vmem:[%s1842_s12 + $0x58] sm:$0xff] %v1195_v15  ;;  %v1187_v17 = vadd.f32 %v1351_v58, %v1186_v16 }
 0x388   : > { %1223 = vst [vmem:[%s1842_s12 + $0x48] sm:$0xff] %v1187_v17 }
 0x38f   : > { %v1541_v18 = vpop.f32.mrf.mxu1 }
 0x390   : > { %v1208_v19 = vadd.f32 %v1541_v18, %v1351_v58 }
 0x391   : > { %v1199_v20 = vpop.f32.mrf.mxu1 }
 0x392   : > { %1228 = vst [vmem:[%s1842_s12 + $0x70] sm:$0xff] %v1208_v19  ;;  %v1200_v21 = vadd.f32 %v1351_v58, %v1199_v20 }
 0x393   : > { %v1542_v22 = vpop.f32.mrf.mxu1 }
 0x394   : > { %1226 = vst [vmem:[%s1842_s12 + $0x60] sm:$0xff] %v1200_v21  ;;  %v1211_v23 = vadd.f32 %v1542_v22, %v1351_v58 }
 0x395   : > { %v1202_v24 = vpop.f32.mrf.mxu1 }
 0x396   : > { %1229 = vst [vmem:[%s1842_s12 + $0x78] sm:$0xff] %v1211_v23  ;;  %v1203_v25 = vadd.f32 %v1351_v58, %v1202_v24 }
 0x398   : > { %1227 = vst [vmem:[%s1842_s12 + $0x68] sm:$0xff] %v1203_v25 }
 0x399 PF: > { %s19_s30 = sadd.s32 1, %s1615_s30  }
 0x39a   : > { %p16_p4 = scmp.ge.s32.totalorder %s19_s30, 6  }
 0x39c   :  { %18 = sbr.rel (!%p16_p4) target bundleno = 1 (0x1), region = 86 }

</bundles_post_ra>
